<compile_context>
chip_gen: v5e
topology: v5e:2x2
jax: 0.10.0
libtpu: 0.0.40
codegen_flags: <defaults>
</compile_context>

<pallas_src>
import functools

import jax
import jax.numpy as jnp
import numpy as np
from jax import lax
from jax.experimental import pallas as pl
from jax.experimental.pallas import tpu as pltpu


def _residual_stack_kernel(x_ref, mask_ref, w3_ref, w1_ref, o_ref, patches_ref,
                           *, shifts, cin, n_layers):
    """Fused residual stack, lane-dense (C, N*H*W) layout, single grid step.

    x_ref      : (Cin, NHW)        input activation (channels on sublanes,
                                    batch+spatial flattened on the lane axis)
    mask_ref   : (9, NHW)  f32     precomputed border masks, one row per tap
    w3_ref     : (L, Crp, 9*Cin)   im2col-reshaped 3x3 conv weights (Cres padded)
    w1_ref     : (L, Ch, Crp)      1x1 conv weights (Cres padded)
    o_ref      : (Ch, NHW)         output activation
    patches_ref: (9*Cin, NHW) f32  VMEM scratch for the im2col patch matrix
    """

    def layer_fn(x, w3, w1):
        r = jnp.maximum(x, 0.0)                              # first ReLU

        # Build the im2col patch matrix: lane rolls (XLU slot) + one multiply
        # by the precomputed (1, NHW) border mask, streamed into VMEM scratch
        # at static sublane offsets (bounds live range per tap).
        for t, s in enumerate(shifts):
            rolled = pltpu.roll(r, shift=s, axis=1) if s else r
            patches_ref[pl.ds(t * cin, cin), :] = (
                rolled * mask_ref[pl.ds(t, 1), :])

        # 3x3 conv as ONE matmul (K = 9*Cin), f32 accumulation on the MXU.
        h = jnp.dot(w3, patches_ref[...],
                    preferred_element_type=jnp.float32)      # (Crp, NHW)
        h = jnp.maximum(h, 0.0)                              # second ReLU

        # 1x1 conv (padded Cres columns of w1 are zero -> no-op).
        y = jnp.dot(w1, h, preferred_element_type=jnp.float32)  # (Ch, NHW)
        return x + y                                         # residual add

    x = x_ref[...].astype(jnp.float32)

    if n_layers <= 4:
        # Shallow stacks: static unroll (example has 2 layers).
        for layer in range(n_layers):
            x = layer_fn(x, w3_ref[layer], w1_ref[layer])
    else:
        # Deep stacks: bounded live ranges via fori_loop, dynamic weight index.
        x = lax.fori_loop(
            0, n_layers,
            lambda l, xv: layer_fn(xv, w3_ref[l], w1_ref[l]), x)

    o_ref[...] = jnp.maximum(x, 0.0).astype(o_ref.dtype)     # final ReLU


def residual_stack_forward(x_nchw, conv3_weights, conv1_weights):
    """Pallas implementation of ResidualStack.forward.

    x_nchw        : (N, Cin, H, W)  — PyTorch layout
    conv3_weights : list of (Cres, Cin, 3, 3)  torch Conv2d weights (OIHW)
    conv1_weights : list of (Ch, Cres, 1, 1)   torch Conv2d weights
    returns       : (N, Ch, H, W)
    """
    N, Cin, H, W = x_nchw.shape
    L = len(conv3_weights)
    Cres = conv3_weights[0].shape[0]
    Ch = conv1_weights[0].shape[0]
    if Ch != Cin:
        raise ValueError(
            f"residual add requires h_dim == in_dim, got in_dim={Cin}, "
            f"h_dim={Ch}")
    HW = H * W
    NHW = N * HW
    Crp = -(-Cres // 8) * 8          # Cres padded to a full f32 sublane tile

    # Batch stacked along the lane axis: (N, C, H, W) -> (C, N*H*W).
    x2d = jnp.transpose(x_nchw, (1, 0, 2, 3)).reshape(Cin, NHW)

    # Precompute per-tap border masks and roll shifts on the host (static
    # shapes only).  Masks are periodic with period HW, so tiling them N
    # times also zeroes any roll wrap across image boundaries in the
    # lane-stacked layout.
    h_idx = np.arange(HW) // W
    w_idx = np.arange(HW) % W
    masks, shifts = [], []
    for oi in (-1, 0, 1):
        for oj in (-1, 0, 1):
            valid = ((h_idx >= -oi) & (h_idx < H - oi) &
                     (w_idx >= -oj) & (w_idx < W - oj))
            masks.append(np.tile(valid.astype(np.float32), N))
            shifts.append((-(oi * W + oj)) % NHW)
    masks = jnp.asarray(np.stack(masks, axis=0))              # (9, NHW) f32

    # Reshape weights in the wrapper (not in the kernel):
    #   w3 im2col: (Cres, Cin, 3, 3) -> (Cres, 3, 3, Cin) -> (Cres, 9*Cin),
    #   column index = (di*3 + dj)*Cin + ci (matches tap stacking order),
    #   then zero-pad Cres rows up to Crp.
    w3 = jnp.stack(
        [jnp.pad(jnp.transpose(w, (0, 2, 3, 1)).reshape(Cres, 9 * Cin),
                 ((0, Crp - Cres), (0, 0)))
         for w in conv3_weights], axis=0)                     # (L, Crp, 9*Cin)
    w1 = jnp.stack(
        [jnp.pad(w[:, :, 0, 0], ((0, 0), (0, Crp - Cres)))
         for w in conv1_weights], axis=0)                     # (L, Ch, Crp)

    itemsize = np.dtype(x_nchw.dtype).itemsize
    cost = pl.CostEstimate(
        flops=2 * L * NHW * (Crp * 9 * Cin + Ch * Crp),
        transcendentals=0,
        bytes_accessed=(Cin * NHW + Ch * NHW) * itemsize
                       + (w3.size + w1.size + masks.size) * 4)

    kernel = functools.partial(_residual_stack_kernel,
                               shifts=tuple(shifts), cin=Cin, n_layers=L)

    out = pl.pallas_call(
        kernel,
        out_shape=jax.ShapeDtypeStruct((Ch, NHW), x_nchw.dtype),
        grid_spec=pltpu.PrefetchScalarGridSpec(
            num_scalar_prefetch=0,
            grid=(1,),                        # single step: batch lives on lanes
            in_specs=[
                pl.BlockSpec((Cin, NHW), lambda n: (0, 0)),
                pl.BlockSpec((9, NHW), lambda n: (0, 0)),
                pl.BlockSpec((L, Crp, 9 * Cin), lambda n: (0, 0, 0)),
                pl.BlockSpec((L, Ch, Crp), lambda n: (0, 0, 0)),
            ],
            out_specs=pl.BlockSpec((Ch, NHW), lambda n: (0, 0)),
            scratch_shapes=[pltpu.VMEM((9 * Cin, NHW), jnp.float32)],
        ),
        compiler_params=pltpu.CompilerParams(
            dimension_semantics=("arbitrary",)),
        cost_estimate=cost,
    )(x2d, masks, w3, w1)

    # (Ch, N*HW) -> (N, Ch, H, W)
    return jnp.transpose(out.reshape(Ch, N, H, W), (1, 0, 2, 3))


def _reference_forward(x_nchw, conv3_weights, conv1_weights):
    """Pure-JAX reference (lax.conv) replicating the PyTorch module."""
    x = x_nchw
    dn = ('NCHW', 'OIHW', 'NCHW')
    for w3, w1 in zip(conv3_weights, conv1_weights):
        r = jax.nn.relu(x)
        h = lax.conv_general_dilated(r, w3, (1, 1), [(1, 1), (1, 1)],
                                     dimension_numbers=dn)
        h = jax.nn.relu(h)
        y = lax.conv_general_dilated(h, w1, (1, 1), [(0, 0), (0, 0)],
                                     dimension_numbers=dn)
        x = x + y
    return jax.nn.relu(x)


if __name__ == "__main__":
    # module hyperparameters (small; residual add requires h_dim == in_dim)
    batch, in_dim, h_dim, res_h_dim, spatial, n_res_layers = 2, 8, 8, 4, 16, 2

    key = jax.random.PRNGKey(0)
    kx, *kw = jax.random.split(key, 1 + 2 * n_res_layers)

    x = jax.random.normal(kx, (batch, in_dim, spatial, spatial), jnp.float32)

    conv3_weights, conv1_weights = [], []
    for li in range(n_res_layers):
        # deterministic kaiming-ish init, PyTorch OIHW weight layout
        fan3 = in_dim * 3 * 3
        w3 = jax.random.normal(kw[2 * li], (res_h_dim, in_dim, 3, 3),
                               jnp.float32) / np.sqrt(fan3)
        fan1 = res_h_dim
        w1 = jax.random.normal(kw[2 * li + 1], (h_dim, res_h_dim, 1, 1),
                               jnp.float32) / np.sqrt(fan1)
        conv3_weights.append(w3)
        conv1_weights.append(w1)

    out = jax.block_until_ready(
        residual_stack_forward(x, conv3_weights, conv1_weights))
    ref = jax.block_until_ready(
        _reference_forward(x, conv3_weights, conv1_weights))

    np.testing.assert_allclose(np.asarray(out), np.asarray(ref),
                               rtol=1e-4, atol=1e-5)
    assert out.shape == (batch, h_dim, spatial, spatial)
    print("KERNEL_OK")
</pallas_src>

<mosaic_0001>
module attributes {stable_mosaic.version = 11 : i64} {
  func.func @_residual_stack_kernel(%arg0: i32, %arg1: memref<8x512xf32, #tpu.memory_space<vmem>>, %arg2: memref<9x512xf32, #tpu.memory_space<vmem>>, %arg3: memref<2x8x72xf32, #tpu.memory_space<vmem>>, %arg4: memref<2x8x8xf32, #tpu.memory_space<vmem>>, %arg5: memref<8x512xf32, #tpu.memory_space<vmem>>, %arg6: memref<72x512xf32, #tpu.memory_space<vmem>>) attributes {dimension_semantics = [#tpu.dimension_semantics<arbitrary>], iteration_bounds = array<i64: 1>, scalar_prefetch = 0 : i64, scratch_operands = 1 : i64, tpu.core_type = #tpu.core_type<tc>, window_params = [{pipeline_mode = #tpu.pipeline_mode<synchronous>, transform_indices = @transform_0, window_bounds = array<i64: 8, 512>}, {pipeline_mode = #tpu.pipeline_mode<synchronous>, transform_indices = @transform_1, window_bounds = array<i64: 9, 512>}, {pipeline_mode = #tpu.pipeline_mode<synchronous>, transform_indices = @transform_2, window_bounds = array<i64: 2, 8, 72>}, {pipeline_mode = #tpu.pipeline_mode<synchronous>, transform_indices = @transform_3, window_bounds = array<i64: 2, 8, 8>}, {pipeline_mode = #tpu.pipeline_mode<synchronous>, transform_indices = @transform_4, window_bounds = array<i64: 8, 512>}]} {
    %c0 = arith.constant 0 : index
    %c0_0 = arith.constant 0 : index
    %0 = vector.load %arg1[%c0, %c0_0] : memref<8x512xf32, #tpu.memory_space<vmem>>, vector<8x512xf32>
    %c0_1 = arith.constant 0 : index
    %c0_2 = arith.constant 0 : index
    %c0_3 = arith.constant 0 : index
    %1 = vector.load %arg3[%c0_1, %c0_2, %c0_3] : memref<2x8x72xf32, #tpu.memory_space<vmem>>, vector<1x8x72xf32>
    %2 = vector.shape_cast %1 : vector<1x8x72xf32> to vector<8x72xf32>
    %c0_4 = arith.constant 0 : index
    %c0_5 = arith.constant 0 : index
    %c0_6 = arith.constant 0 : index
    %3 = vector.load %arg4[%c0_4, %c0_5, %c0_6] : memref<2x8x8xf32, #tpu.memory_space<vmem>>, vector<1x8x8xf32>
    %4 = vector.shape_cast %3 : vector<1x8x8xf32> to vector<8x8xf32>
    %cst = arith.constant 0.000000e+00 : f32
    %5 = vector.broadcast %cst : f32 to vector<8x512xf32>
    %6 = arith.maximumf %0, %5 : vector<8x512xf32>
    %c17_i32 = arith.constant 17 : i32
    %7 = tpu.dynamic_rotate %6 by %c17_i32 dim 1 : vector<8x512xf32>, i32 -> vector<8x512xf32>
    %c0_7 = arith.constant 0 : index
    %c0_8 = arith.constant 0 : index
    %8 = vector.load %arg2[%c0_7, %c0_8] : memref<9x512xf32, #tpu.memory_space<vmem>>, vector<1x512xf32>
    %9 = vector.broadcast %8 : vector<1x512xf32> to vector<8x512xf32>
    %10 = arith.mulf %7, %9 : vector<8x512xf32>
    %c0_9 = arith.constant 0 : index
    %c0_10 = arith.constant 0 : index
    %11 = vector.load %arg6[%c0_9, %c0_10] : memref<72x512xf32, #tpu.memory_space<vmem>>, vector<8x512xf32>
    tpu.vector_store %arg6[%c0_9, %c0_10], %10 {strides = array<i32>} : memref<72x512xf32, #tpu.memory_space<vmem>>, vector<8x512xf32>,
    %c16_i32 = arith.constant 16 : i32
    %12 = tpu.dynamic_rotate %6 by %c16_i32 dim 1 : vector<8x512xf32>, i32 -> vector<8x512xf32>
    %c1 = arith.constant 1 : index
    %c0_11 = arith.constant 0 : index
    %13 = vector.load %arg2[%c1, %c0_11] : memref<9x512xf32, #tpu.memory_space<vmem>>, vector<1x512xf32>
    %14 = vector.broadcast %13 : vector<1x512xf32> to vector<8x512xf32>
    %15 = arith.mulf %12, %14 : vector<8x512xf32>
    %c8 = arith.constant 8 : index
    %c0_12 = arith.constant 0 : index
    %16 = vector.load %arg6[%c8, %c0_12] : memref<72x512xf32, #tpu.memory_space<vmem>>, vector<8x512xf32>
    tpu.vector_store %arg6[%c8, %c0_12], %15 {strides = array<i32>} : memref<72x512xf32, #tpu.memory_space<vmem>>, vector<8x512xf32>,
    %c15_i32 = arith.constant 15 : i32
    %17 = tpu.dynamic_rotate %6 by %c15_i32 dim 1 : vector<8x512xf32>, i32 -> vector<8x512xf32>
    %c2 = arith.constant 2 : index
    %c0_13 = arith.constant 0 : index
    %18 = vector.load %arg2[%c2, %c0_13] : memref<9x512xf32, #tpu.memory_space<vmem>>, vector<1x512xf32>
    %19 = vector.broadcast %18 : vector<1x512xf32> to vector<8x512xf32>
    %20 = arith.mulf %17, %19 : vector<8x512xf32>
    %c16 = arith.constant 16 : index
    %c0_14 = arith.constant 0 : index
    %21 = vector.load %arg6[%c16, %c0_14] : memref<72x512xf32, #tpu.memory_space<vmem>>, vector<8x512xf32>
    tpu.vector_store %arg6[%c16, %c0_14], %20 {strides = array<i32>} : memref<72x512xf32, #tpu.memory_space<vmem>>, vector<8x512xf32>,
    %c1_i32 = arith.constant 1 : i32
    %22 = tpu.dynamic_rotate %6 by %c1_i32 dim 1 : vector<8x512xf32>, i32 -> vector<8x512xf32>
    %c3 = arith.constant 3 : index
    %c0_15 = arith.constant 0 : index
    %23 = vector.load %arg2[%c3, %c0_15] : memref<9x512xf32, #tpu.memory_space<vmem>>, vector<1x512xf32>
    %24 = vector.broadcast %23 : vector<1x512xf32> to vector<8x512xf32>
    %25 = arith.mulf %22, %24 : vector<8x512xf32>
    %c24 = arith.constant 24 : index
    %c0_16 = arith.constant 0 : index
    %26 = vector.load %arg6[%c24, %c0_16] : memref<72x512xf32, #tpu.memory_space<vmem>>, vector<8x512xf32>
    tpu.vector_store %arg6[%c24, %c0_16], %25 {strides = array<i32>} : memref<72x512xf32, #tpu.memory_space<vmem>>, vector<8x512xf32>,
    %c4 = arith.constant 4 : index
    %c0_17 = arith.constant 0 : index
    %27 = vector.load %arg2[%c4, %c0_17] : memref<9x512xf32, #tpu.memory_space<vmem>>, vector<1x512xf32>
    %28 = vector.broadcast %27 : vector<1x512xf32> to vector<8x512xf32>
    %29 = arith.mulf %6, %28 : vector<8x512xf32>
    %c32 = arith.constant 32 : index
    %c0_18 = arith.constant 0 : index
    %30 = vector.load %arg6[%c32, %c0_18] : memref<72x512xf32, #tpu.memory_space<vmem>>, vector<8x512xf32>
    tpu.vector_store %arg6[%c32, %c0_18], %29 {strides = array<i32>} : memref<72x512xf32, #tpu.memory_space<vmem>>, vector<8x512xf32>,
    %c511_i32 = arith.constant 511 : i32
    %31 = tpu.dynamic_rotate %6 by %c511_i32 dim 1 : vector<8x512xf32>, i32 -> vector<8x512xf32>
    %c5 = arith.constant 5 : index
    %c0_19 = arith.constant 0 : index
    %32 = vector.load %arg2[%c5, %c0_19] : memref<9x512xf32, #tpu.memory_space<vmem>>, vector<1x512xf32>
    %33 = vector.broadcast %32 : vector<1x512xf32> to vector<8x512xf32>
    %34 = arith.mulf %31, %33 : vector<8x512xf32>
    %c40 = arith.constant 40 : index
    %c0_20 = arith.constant 0 : index
    %35 = vector.load %arg6[%c40, %c0_20] : memref<72x512xf32, #tpu.memory_space<vmem>>, vector<8x512xf32>
    tpu.vector_store %arg6[%c40, %c0_20], %34 {strides = array<i32>} : memref<72x512xf32, #tpu.memory_space<vmem>>, vector<8x512xf32>,
    %c497_i32 = arith.constant 497 : i32
    %36 = tpu.dynamic_rotate %6 by %c497_i32 dim 1 : vector<8x512xf32>, i32 -> vector<8x512xf32>
    %c6 = arith.constant 6 : index
    %c0_21 = arith.constant 0 : index
    %37 = vector.load %arg2[%c6, %c0_21] : memref<9x512xf32, #tpu.memory_space<vmem>>, vector<1x512xf32>
    %38 = vector.broadcast %37 : vector<1x512xf32> to vector<8x512xf32>
    %39 = arith.mulf %36, %38 : vector<8x512xf32>
    %c48 = arith.constant 48 : index
    %c0_22 = arith.constant 0 : index
    %40 = vector.load %arg6[%c48, %c0_22] : memref<72x512xf32, #tpu.memory_space<vmem>>, vector<8x512xf32>
    tpu.vector_store %arg6[%c48, %c0_22], %39 {strides = array<i32>} : memref<72x512xf32, #tpu.memory_space<vmem>>, vector<8x512xf32>,
    %c496_i32 = arith.constant 496 : i32
    %41 = tpu.dynamic_rotate %6 by %c496_i32 dim 1 : vector<8x512xf32>, i32 -> vector<8x512xf32>
    %c7 = arith.constant 7 : index
    %c0_23 = arith.constant 0 : index
    %42 = vector.load %arg2[%c7, %c0_23] : memref<9x512xf32, #tpu.memory_space<vmem>>, vector<1x512xf32>
    %43 = vector.broadcast %42 : vector<1x512xf32> to vector<8x512xf32>
    %44 = arith.mulf %41, %43 : vector<8x512xf32>
    %c56 = arith.constant 56 : index
    %c0_24 = arith.constant 0 : index
    %45 = vector.load %arg6[%c56, %c0_24] : memref<72x512xf32, #tpu.memory_space<vmem>>, vector<8x512xf32>
    tpu.vector_store %arg6[%c56, %c0_24], %44 {strides = array<i32>} : memref<72x512xf32, #tpu.memory_space<vmem>>, vector<8x512xf32>,
    %c495_i32 = arith.constant 495 : i32
    %46 = tpu.dynamic_rotate %6 by %c495_i32 dim 1 : vector<8x512xf32>, i32 -> vector<8x512xf32>
    %c8_25 = arith.constant 8 : index
    %c0_26 = arith.constant 0 : index
    %47 = vector.load %arg2[%c8_25, %c0_26] : memref<9x512xf32, #tpu.memory_space<vmem>>, vector<1x512xf32>
    %48 = vector.broadcast %47 : vector<1x512xf32> to vector<8x512xf32>
    %49 = arith.mulf %46, %48 : vector<8x512xf32>
    %c64 = arith.constant 64 : index
    %c0_27 = arith.constant 0 : index
    %50 = vector.load %arg6[%c64, %c0_27] : memref<72x512xf32, #tpu.memory_space<vmem>>, vector<8x512xf32>
    tpu.vector_store %arg6[%c64, %c0_27], %49 {strides = array<i32>} : memref<72x512xf32, #tpu.memory_space<vmem>>, vector<8x512xf32>,
    %c0_28 = arith.constant 0 : index
    %c0_29 = arith.constant 0 : index
    %51 = vector.load %arg6[%c0_28, %c0_29] : memref<72x512xf32, #tpu.memory_space<vmem>>, vector<72x512xf32>
    %cst_30 = arith.constant dense<0.000000e+00> : vector<8x512xf32>
    %52 = tpu.matmul %2, %51, %cst_30 {dimension_numbers = #tpu.dot_dimension_numbers<[1], [0], [0], [1], [0, 0, 1, 1], [], []>} : vector<8x72xf32>, vector<72x512xf32>, vector<8x512xf32> -> vector<8x512xf32>
    %cst_31 = arith.constant 0.000000e+00 : f32
    %53 = vector.broadcast %cst_31 : f32 to vector<8x512xf32>
    %54 = arith.maximumf %52, %53 : vector<8x512xf32>
    %cst_32 = arith.constant dense<0.000000e+00> : vector<8x512xf32>
    %55 = tpu.matmul %4, %54, %cst_32 {dimension_numbers = #tpu.dot_dimension_numbers<[1], [0], [0], [1], [0, 0, 1, 1], [], []>} : vector<8x8xf32>, vector<8x512xf32>, vector<8x512xf32> -> vector<8x512xf32>
    %56 = arith.addf %0, %55 : vector<8x512xf32>
    %c1_33 = arith.constant 1 : index
    %c0_34 = arith.constant 0 : index
    %c0_35 = arith.constant 0 : index
    %57 = vector.load %arg3[%c1_33, %c0_34, %c0_35] : memref<2x8x72xf32, #tpu.memory_space<vmem>>, vector<1x8x72xf32>
    %58 = vector.shape_cast %57 : vector<1x8x72xf32> to vector<8x72xf32>
    %c1_36 = arith.constant 1 : index
    %c0_37 = arith.constant 0 : index
    %c0_38 = arith.constant 0 : index
    %59 = vector.load %arg4[%c1_36, %c0_37, %c0_38] : memref<2x8x8xf32, #tpu.memory_space<vmem>>, vector<1x8x8xf32>
    %60 = vector.shape_cast %59 : vector<1x8x8xf32> to vector<8x8xf32>
    %cst_39 = arith.constant 0.000000e+00 : f32
    %61 = vector.broadcast %cst_39 : f32 to vector<8x512xf32>
    %62 = arith.maximumf %56, %61 : vector<8x512xf32>
    %c17_i32_40 = arith.constant 17 : i32
    %63 = tpu.dynamic_rotate %62 by %c17_i32_40 dim 1 : vector<8x512xf32>, i32 -> vector<8x512xf32>
    %c0_41 = arith.constant 0 : index
    %c0_42 = arith.constant 0 : index
    %64 = vector.load %arg2[%c0_41, %c0_42] : memref<9x512xf32, #tpu.memory_space<vmem>>, vector<1x512xf32>
    %65 = vector.broadcast %64 : vector<1x512xf32> to vector<8x512xf32>
    %66 = arith.mulf %63, %65 : vector<8x512xf32>
    %c0_43 = arith.constant 0 : index
    %c0_44 = arith.constant 0 : index
    %67 = vector.load %arg6[%c0_43, %c0_44] : memref<72x512xf32, #tpu.memory_space<vmem>>, vector<8x512xf32>
    tpu.vector_store %arg6[%c0_43, %c0_44], %66 {strides = array<i32>} : memref<72x512xf32, #tpu.memory_space<vmem>>, vector<8x512xf32>,
    %c16_i32_45 = arith.constant 16 : i32
    %68 = tpu.dynamic_rotate %62 by %c16_i32_45 dim 1 : vector<8x512xf32>, i32 -> vector<8x512xf32>
    %c1_46 = arith.constant 1 : index
    %c0_47 = arith.constant 0 : index
    %69 = vector.load %arg2[%c1_46, %c0_47] : memref<9x512xf32, #tpu.memory_space<vmem>>, vector<1x512xf32>
    %70 = vector.broadcast %69 : vector<1x512xf32> to vector<8x512xf32>
    %71 = arith.mulf %68, %70 : vector<8x512xf32>
    %c8_48 = arith.constant 8 : index
    %c0_49 = arith.constant 0 : index
    %72 = vector.load %arg6[%c8_48, %c0_49] : memref<72x512xf32, #tpu.memory_space<vmem>>, vector<8x512xf32>
    tpu.vector_store %arg6[%c8_48, %c0_49], %71 {strides = array<i32>} : memref<72x512xf32, #tpu.memory_space<vmem>>, vector<8x512xf32>,
    %c15_i32_50 = arith.constant 15 : i32
    %73 = tpu.dynamic_rotate %62 by %c15_i32_50 dim 1 : vector<8x512xf32>, i32 -> vector<8x512xf32>
    %c2_51 = arith.constant 2 : index
    %c0_52 = arith.constant 0 : index
    %74 = vector.load %arg2[%c2_51, %c0_52] : memref<9x512xf32, #tpu.memory_space<vmem>>, vector<1x512xf32>
    %75 = vector.broadcast %74 : vector<1x512xf32> to vector<8x512xf32>
    %76 = arith.mulf %73, %75 : vector<8x512xf32>
    %c16_53 = arith.constant 16 : index
    %c0_54 = arith.constant 0 : index
    %77 = vector.load %arg6[%c16_53, %c0_54] : memref<72x512xf32, #tpu.memory_space<vmem>>, vector<8x512xf32>
    tpu.vector_store %arg6[%c16_53, %c0_54], %76 {strides = array<i32>} : memref<72x512xf32, #tpu.memory_space<vmem>>, vector<8x512xf32>,
    %c1_i32_55 = arith.constant 1 : i32
    %78 = tpu.dynamic_rotate %62 by %c1_i32_55 dim 1 : vector<8x512xf32>, i32 -> vector<8x512xf32>
    %c3_56 = arith.constant 3 : index
    %c0_57 = arith.constant 0 : index
    %79 = vector.load %arg2[%c3_56, %c0_57] : memref<9x512xf32, #tpu.memory_space<vmem>>, vector<1x512xf32>
    %80 = vector.broadcast %79 : vector<1x512xf32> to vector<8x512xf32>
    %81 = arith.mulf %78, %80 : vector<8x512xf32>
    %c24_58 = arith.constant 24 : index
    %c0_59 = arith.constant 0 : index
    %82 = vector.load %arg6[%c24_58, %c0_59] : memref<72x512xf32, #tpu.memory_space<vmem>>, vector<8x512xf32>
    tpu.vector_store %arg6[%c24_58, %c0_59], %81 {strides = array<i32>} : memref<72x512xf32, #tpu.memory_space<vmem>>, vector<8x512xf32>,
    %c4_60 = arith.constant 4 : index
    %c0_61 = arith.constant 0 : index
    %83 = vector.load %arg2[%c4_60, %c0_61] : memref<9x512xf32, #tpu.memory_space<vmem>>, vector<1x512xf32>
    %84 = vector.broadcast %83 : vector<1x512xf32> to vector<8x512xf32>
    %85 = arith.mulf %62, %84 : vector<8x512xf32>
    %c32_62 = arith.constant 32 : index
    %c0_63 = arith.constant 0 : index
    %86 = vector.load %arg6[%c32_62, %c0_63] : memref<72x512xf32, #tpu.memory_space<vmem>>, vector<8x512xf32>
    tpu.vector_store %arg6[%c32_62, %c0_63], %85 {strides = array<i32>} : memref<72x512xf32, #tpu.memory_space<vmem>>, vector<8x512xf32>,
    %c511_i32_64 = arith.constant 511 : i32
    %87 = tpu.dynamic_rotate %62 by %c511_i32_64 dim 1 : vector<8x512xf32>, i32 -> vector<8x512xf32>
    %c5_65 = arith.constant 5 : index
    %c0_66 = arith.constant 0 : index
    %88 = vector.load %arg2[%c5_65, %c0_66] : memref<9x512xf32, #tpu.memory_space<vmem>>, vector<1x512xf32>
    %89 = vector.broadcast %88 : vector<1x512xf32> to vector<8x512xf32>
    %90 = arith.mulf %87, %89 : vector<8x512xf32>
    %c40_67 = arith.constant 40 : index
    %c0_68 = arith.constant 0 : index
    %91 = vector.load %arg6[%c40_67, %c0_68] : memref<72x512xf32, #tpu.memory_space<vmem>>, vector<8x512xf32>
    tpu.vector_store %arg6[%c40_67, %c0_68], %90 {strides = array<i32>} : memref<72x512xf32, #tpu.memory_space<vmem>>, vector<8x512xf32>,
    %c497_i32_69 = arith.constant 497 : i32
    %92 = tpu.dynamic_rotate %62 by %c497_i32_69 dim 1 : vector<8x512xf32>, i32 -> vector<8x512xf32>
    %c6_70 = arith.constant 6 : index
    %c0_71 = arith.constant 0 : index
    %93 = vector.load %arg2[%c6_70, %c0_71] : memref<9x512xf32, #tpu.memory_space<vmem>>, vector<1x512xf32>
    %94 = vector.broadcast %93 : vector<1x512xf32> to vector<8x512xf32>
    %95 = arith.mulf %92, %94 : vector<8x512xf32>
    %c48_72 = arith.constant 48 : index
    %c0_73 = arith.constant 0 : index
    %96 = vector.load %arg6[%c48_72, %c0_73] : memref<72x512xf32, #tpu.memory_space<vmem>>, vector<8x512xf32>
    tpu.vector_store %arg6[%c48_72, %c0_73], %95 {strides = array<i32>} : memref<72x512xf32, #tpu.memory_space<vmem>>, vector<8x512xf32>,
    %c496_i32_74 = arith.constant 496 : i32
    %97 = tpu.dynamic_rotate %62 by %c496_i32_74 dim 1 : vector<8x512xf32>, i32 -> vector<8x512xf32>
    %c7_75 = arith.constant 7 : index
    %c0_76 = arith.constant 0 : index
    %98 = vector.load %arg2[%c7_75, %c0_76] : memref<9x512xf32, #tpu.memory_space<vmem>>, vector<1x512xf32>
    %99 = vector.broadcast %98 : vector<1x512xf32> to vector<8x512xf32>
    %100 = arith.mulf %97, %99 : vector<8x512xf32>
    %c56_77 = arith.constant 56 : index
    %c0_78 = arith.constant 0 : index
    %101 = vector.load %arg6[%c56_77, %c0_78] : memref<72x512xf32, #tpu.memory_space<vmem>>, vector<8x512xf32>
    tpu.vector_store %arg6[%c56_77, %c0_78], %100 {strides = array<i32>} : memref<72x512xf32, #tpu.memory_space<vmem>>, vector<8x512xf32>,
    %c495_i32_79 = arith.constant 495 : i32
    %102 = tpu.dynamic_rotate %62 by %c495_i32_79 dim 1 : vector<8x512xf32>, i32 -> vector<8x512xf32>
    %c8_80 = arith.constant 8 : index
    %c0_81 = arith.constant 0 : index
    %103 = vector.load %arg2[%c8_80, %c0_81] : memref<9x512xf32, #tpu.memory_space<vmem>>, vector<1x512xf32>
    %104 = vector.broadcast %103 : vector<1x512xf32> to vector<8x512xf32>
    %105 = arith.mulf %102, %104 : vector<8x512xf32>
    %c64_82 = arith.constant 64 : index
    %c0_83 = arith.constant 0 : index
    %106 = vector.load %arg6[%c64_82, %c0_83] : memref<72x512xf32, #tpu.memory_space<vmem>>, vector<8x512xf32>
    tpu.vector_store %arg6[%c64_82, %c0_83], %105 {strides = array<i32>} : memref<72x512xf32, #tpu.memory_space<vmem>>, vector<8x512xf32>,
    %c0_84 = arith.constant 0 : index
    %c0_85 = arith.constant 0 : index
    %107 = vector.load %arg6[%c0_84, %c0_85] : memref<72x512xf32, #tpu.memory_space<vmem>>, vector<72x512xf32>
    %cst_86 = arith.constant dense<0.000000e+00> : vector<8x512xf32>
    %108 = tpu.matmul %58, %107, %cst_86 {dimension_numbers = #tpu.dot_dimension_numbers<[1], [0], [0], [1], [0, 0, 1, 1], [], []>} : vector<8x72xf32>, vector<72x512xf32>, vector<8x512xf32> -> vector<8x512xf32>
    %cst_87 = arith.constant 0.000000e+00 : f32
    %109 = vector.broadcast %cst_87 : f32 to vector<8x512xf32>
    %110 = arith.maximumf %108, %109 : vector<8x512xf32>
    %cst_88 = arith.constant dense<0.000000e+00> : vector<8x512xf32>
    %111 = tpu.matmul %60, %110, %cst_88 {dimension_numbers = #tpu.dot_dimension_numbers<[1], [0], [0], [1], [0, 0, 1, 1], [], []>} : vector<8x8xf32>, vector<8x512xf32>, vector<8x512xf32> -> vector<8x512xf32>
    %112 = arith.addf %56, %111 : vector<8x512xf32>
    %cst_89 = arith.constant 0.000000e+00 : f32
    %113 = vector.broadcast %cst_89 : f32 to vector<8x512xf32>
    %114 = arith.maximumf %112, %113 : vector<8x512xf32>
    %c0_90 = arith.constant 0 : index
    %c0_91 = arith.constant 0 : index
    %115 = vector.load %arg5[%c0_90, %c0_91] : memref<8x512xf32, #tpu.memory_space<vmem>>, vector<8x512xf32>
    tpu.vector_store %arg5[%c0_90, %c0_91], %114 {strides = array<i32>} : memref<8x512xf32, #tpu.memory_space<vmem>>, vector<8x512xf32>,
    return
  }
  func.func @transform_0(%arg0: i32) -> (i32, i32) {
    %c0_i32 = arith.constant 0 : i32
    %c0_i32_0 = arith.constant 0 : i32
    %c0_i32_1 = arith.constant 0 : i32
    return %c0_i32, %c0_i32_0 : i32, i32
  }
  func.func @transform_1(%arg0: i32) -> (i32, i32) {
    %c0_i32 = arith.constant 0 : i32
    %c0_i32_0 = arith.constant 0 : i32
    %c0_i32_1 = arith.constant 0 : i32
    return %c0_i32, %c0_i32_0 : i32, i32
  }
  func.func @transform_2(%arg0: i32) -> (i32, i32, i32) {
    %c0_i32 = arith.constant 0 : i32
    %c0_i32_0 = arith.constant 0 : i32
    %c0_i32_1 = arith.constant 0 : i32
    %c0_i32_2 = arith.constant 0 : i32
    return %c0_i32, %c0_i32_0, %c0_i32_1 : i32, i32, i32
  }
  func.func @transform_3(%arg0: i32) -> (i32, i32, i32) {
    %c0_i32 = arith.constant 0 : i32
    %c0_i32_0 = arith.constant 0 : i32
    %c0_i32_1 = arith.constant 0 : i32
    %c0_i32_2 = arith.constant 0 : i32
    return %c0_i32, %c0_i32_0, %c0_i32_1 : i32, i32, i32
  }
  func.func @transform_4(%arg0: i32) -> (i32, i32) {
    %c0_i32 = arith.constant 0 : i32
    %c0_i32_0 = arith.constant 0 : i32
    %c0_i32_1 = arith.constant 0 : i32
    return %c0_i32, %c0_i32_0 : i32, i32
  }
}

</mosaic_0001>

<bundles_post_ra>
// kernel: tpu_custom_call.1
= control target key start
LH: loop header
LB: loop body
LE: loop exit
PB: predicated region body
PF: predicated region fallthrough
CT: control target
= control target key end

     0   :  { %9 = vsyncpa [#allocation4], 0  ;;  %s1838_s0 = inlined_call_operand.hbm [shape: f32[8,512], index: 0, kind: input, shape index: {}]   ;;  %s1839_s1 = inlined_call_operand.hbm [shape: f32[9,512], index: 1, kind: input, shape index: {}]   ;;  %s1840_s2 = inlined_call_operand.hbm [shape: f32[2,8,72], index: 2, kind: input, shape index: {}]   ;;  %s1841_s3 = inlined_call_operand.hbm [shape: f32[2,8,8], index: 3, kind: input, shape index: {}]   ;;  %s1842_s4 = inlined_call_operand.hbm [shape: f32[8,512], index: 4, kind: output, shape index: {}]  }
   0x1   :  { %10 = vsyncpa [#allocation7], 0 }
   0x2   :  { %11 = vsyncpa [#allocation10], 0  ;;  %s28_s17 = sshll.u32 %s1839_s1, 4  ;;  %s29_s17 = int_to_ptr.hbm [resolvable:$true] %s28_s17 }
   0x3   :  { %12 = vsyncpa [#allocation5], 0  ;;  %s1241_s18 = smov [#allocation6]   ;;  %s18_s22 = sshll.u32 %s1838_s0, 4  ;;  %s19_s22 = int_to_ptr.hbm [resolvable:$true] %s18_s22 }
   0x4   :  { %s30_s19 = sshll.u32 %s1241_s18, 4  ;;  %s1242_s23 = smov 512   ;;  %s31_s19 = int_to_ptr.vmem [resolvable:$true] %s30_s19 }
   0x5   :  { %s1243_s24 = smov 32   ;;  %s1244_s25 = smov [#allocation3]  }
   0x6   :  { %36 = dma.hbm_to_vmem [thread:$0]  %s29_s17, 1024, %s31_s19, [#allocation7], %s1242_s23, %s1242_s23, %s1243_s24  }
   0x7   :  { %s20_s26 = sshll.u32 %s1244_s25, 4  ;;  %s41_s29 = sshll.u32 %s1840_s2, 4  ;;  %s21_s26 = int_to_ptr.vmem [resolvable:$true] %s20_s26  ;;  %s42_s29 = int_to_ptr.hbm [resolvable:$true] %s41_s29 }
   0x8   :  { %23 = dma.hbm_to_vmem [thread:$0]  %s19_s22, 512, %s21_s26, [#allocation4]  }
   0x9   :  { %s1245_s1 = smov [#allocation8]   ;;  %s54_s0 = sshll.u32 %s1841_s3, 4  ;;  %s55_s0 = int_to_ptr.hbm [resolvable:$true] %s54_s0 }
   0xa   :  { %s43_s30 = sshll.u32 %s1245_s1, 4  ;;  %s1246_s7 = smov 128   ;;  %s44_s30 = int_to_ptr.vmem [resolvable:$true] %s43_s30 }
   0xb   :  { %s1247_s8 = smov 8   ;;  %s1248_s9 = smov [#allocation9]  }
   0xc   :  { %49 = dma.hbm_to_vmem [thread:$0]  %s42_s29, 256, %s44_s30, [#allocation7], %s1246_s7, %s1246_s7, %s1247_s8  }
   0xd   :  { %s56_s10 = sshll.u32 %s1248_s9, 4  ;;  %s57_s10 = int_to_ptr.vmem [resolvable:$true] %s56_s10 }
   0xe   :  { %62 = dma.hbm_to_vmem [thread:$0]  %s55_s0, 256, %s57_s10, [#allocation10], %s1246_s7, %s1246_s7, %s1247_s8  }
   0xf   :  { %1233 = dma.done.wait [#allocation4], 512  }
  0x10   :  { %1234 = vsyncadd [#allocation4], 4294966784 }
  0x11   :  { %1235 = dma.done.wait [#allocation7], 1280  }
  0x12   :  { %1236 = vsyncadd [#allocation7], 4294966016 }
  0x13   :  { %1237 = dma.done.wait [#allocation10], 256  }
  0x14   :  { %1238 = vsyncadd [#allocation10], 4294967040  ;;  %v1295_v0 = vld [vmem:[#allocation3 + $0x18] sm:$0xff]  ;;  %v1297_v1 = vld [vmem:[#allocation3 + $0x10] sm:$0xff]  ;;  %s1249_s2 = smov 111   ;;  %s1250_s3 = smov 112   ;;  %v97_v10 = vlaneseq }
  0x15   :  { %v1299_v2 = vld [vmem:[#allocation3] sm:$0xff]  ;;  %v1302_v3 = vmax.f32 %v1295_v0, 0.0  ;;  %v1305_v4 = vmax.f32 %v1297_v1, 0.0  ;;  %s1251_s11 = smov 113   ;;  %s1252_s12 = smov 127   ;;  %v1334_v6 = vld [vmem:[#allocation3 + $0x8] sm:$0xff] }
  0x16   :  { %v1308_v5 = vmax.f32 %v1299_v2, 0.0  ;;  %v1337_v7 = vmax.f32 %v1334_v6, 0.0  ;;  %s1253_s13 = smov 1   ;;  %s1254_s14 = smov 15   ;;  %v1381_v12 = vand.u32 127, %v97_v10  ;;  %vm401_vm8 = vcmask 588800  }
  0x17   :  { %339 = vrot.lane.b32.xlu1 %v1302_v3, %s1249_s2  ;;  %305 = vrot.lane.b32.xlu2 %v1305_v4, %s1250_s3  ;;  %s1255_s15 = smov 16   ;;  %s1256_s16 = smov 17   ;;  %v1383_v13 = vld [vmem:[#allocation6 + $0x20] ss:$8 sm:$0xf]  ;;  %vm489_vm9 = vcmask 64512  }
  0x18   :  { %333 = vrot.lane.b32.xlu0 %v1308_v5, %s1249_s2  ;;  %vm341_vm0 = vcmp.lt.s32.totalorder %v1381_v12, 111  ;;  %v352_v14 = vperm.slane %v1383_v13, 3  ;;  %v1392_v20 = vld [vmem:[#allocation6 + $0x7] ss:$8 sm:$0xf]  ;;  %vm309_vm1 = vcmp.lt.s32.totalorder %v1381_v12, 112 }
  0x19   :  { %v320_v21 = vperm.slane %v1392_v20, 3  ;;  %v351_v22 = vperm.slane %v1383_v13, 2  ;;  %v319_v26 = vperm.slane %v1392_v20, 2  ;;  %v1411_v31 = vld [vmem:[#allocation6 + $0x6] ss:$8 sm:$0xf] }
  0x1a   :  { %v287_v34 = vperm.slane %v1411_v31, 2  ;;  %vm277_vm2 = vcmp.lt.s32.totalorder %v1381_v12, 113  ;;  %v288_v35 = vperm.slane %v1411_v31, 3  ;;  %v1428_v42 = vld [vmem:[#allocation6 + $0x4] ss:$8 sm:$0xf] }
  0x1b   :  { %v1430_v43 = vld [vmem:[#allocation6 + $0x5] ss:$8 sm:$0xf]  ;;  %v223_v45 = vperm.slane %v1428_v42, 2  ;;  %vm245_vm3 = vcmp.lt.s32.totalorder %v1381_v12, 127  ;;  %v224_v47 = vperm.slane %v1428_v42, 3 }
  0x1c   :  { %v255_v44 = vperm.slane %v1430_v43, 2  ;;  %v256_v46 = vperm.slane %v1430_v43, 3  ;;  %v1451_v57 = vld [vmem:[#allocation6 + $0x3] ss:$8 sm:$0xf]  ;;  %vm194_vm4 = vcmp.lt.s32.totalorder %v1381_v12, 1 }
  0x1d   :  { %v231_v54 = vmul.f32 %v223_v45, %v1305_v4  ;;  %v232_v56 = vmul.f32 %v224_v47, %v1302_v3  ;;  %v205_v58 = vperm.slane %v1451_v57, 3  ;;  %v204_v59 = vperm.slane %v1451_v57, 2  ;;  %v1464_v10 = vld [vmem:[#allocation6 + $0x2] ss:$8 sm:$0xf]  ;;  %s1257_s17 = smov [#allocation11]  }
  0x1e   :  { %vm162_vm5 = vcmp.lt.s32.totalorder %v1381_v12, 15  ;;  %vm130_vm6 = vcmp.lt.s32.totalorder %v1381_v12, 16  ;;  %v318_v45 = vperm.slane %v1392_v20, 1  ;;  %vm99_vm7 = vcmp.lt.s32.totalorder %v1381_v12, 17  ;;  %s1066_s18 = sshll.u32 %s1257_s17, 4  ;;  %s1068_s21 = sshll.u32 %s1842_s4, 4  ;;  %s1067_s18 = int_to_ptr.vmem [resolvable:$true] %s1066_s18  ;;  %s1069_s21 = int_to_ptr.hbm [resolvable:$true] %s1068_s21 }
  0x1f   :  { %307 = vrot.lane.b32.xlu2 %v1302_v3, %s1250_s3  ;;  %301 = vrot.lane.b32.xlu1 %v1308_v5, %s1250_s3 }
  0x20   :  { %337 = vrot.lane.b32.xlu0 %v1305_v4, %s1249_s2 }
  0x27   :  { %275 = vrot.lane.b32.xlu2 %v1302_v3, %s1251_s11  ;;  %273 = vrot.lane.b32.xlu1 %v1305_v4, %s1251_s11 }
  0x28   :  { %269 = vrot.lane.b32.xlu0 %v1308_v5, %s1251_s11 }
  0x2f   :  { %243 = vrot.lane.b32.xlu2 %v1302_v3, %s1252_s12  ;;  %241 = vrot.lane.b32.xlu1 %v1305_v4, %s1252_s12 }
  0x30   :  { %237 = vrot.lane.b32.xlu0 %v1308_v5, %s1252_s12 }
  0x37   :  { %192 = vrot.lane.b32.xlu2 %v1302_v3, %s1253_s13  ;;  %190 = vrot.lane.b32.xlu1 %v1305_v4, %s1253_s13 }
  0x38   :  { %188 = vrot.lane.b32.xlu0 %v1337_v7, %s1253_s13 }
  0x3f   :  { %160 = vrot.lane.b32.xlu2 %v1302_v3, %s1254_s14  ;;  %158 = vrot.lane.b32.xlu1 %v1305_v4, %s1254_s14 }
  0x40   :  { %156 = vrot.lane.b32.xlu0 %v1337_v7, %s1254_s14 }
  0x47   :  { %126 = vrot.lane.b32.xlu2 %v1305_v4, %s1255_s15  ;;  %124 = vrot.lane.b32.xlu1 %v1337_v7, %s1255_s15 }
  0x48   :  { %335 = vrot.lane.b32.xlu0 %v1337_v7, %s1249_s2 }
  0x4f   :  { %91 = vrot.lane.b32.xlu2 %v1337_v7, %s1256_s16  ;;  %303 = vrot.lane.b32.xlu1 %v1337_v7, %s1250_s3 }
  0x50   :  { %128 = vrot.lane.b32.xlu0 %v1302_v3, %s1255_s15 }
  0x57   :  { %271 = vrot.lane.b32.xlu2 %v1337_v7, %s1251_s11  ;;  %95 = vrot.lane.b32.xlu1 %v1302_v3, %s1256_s16 }
  0x58   :  { %93 = vrot.lane.b32.xlu0 %v1305_v4, %s1256_s16 }
  0x5f   :  { %154 = vrot.lane.b32.xlu2 %v1308_v5, %s1254_s14  ;;  %186 = vrot.lane.b32.xlu1 %v1308_v5, %s1253_s13 }
  0x60   :  { %239 = vrot.lane.b32.xlu0 %v1337_v7, %s1252_s12 }
  0x67   :  { %89 = vrot.lane.b32.xlu1 %v1308_v5, %s1256_s16 }
  0x68   :  { %122 = vrot.lane.b32.xlu0 %v1308_v5, %s1255_s15 }
  0x71   :  { %v1379_v8 = vpop.permute.xlu2 %305 }
  0x79   :  { %v308_v9 = vpop.permute.xlu2 %307 }
  0x7a   :  { %v310_v27 = vsel %vm309_vm1, %v1379_v8, %v308_v9 }
  0x7b   :  { %v327_v32 = vmul.f32 %v319_v26, %v310_v27 }
  0x81   :  { %v276_v11 = vpop.permute.xlu2 %275 }
  0x89   :  { %v340_v15 = vpop.permute.xlu1 %339  ;;  %v244_v19 = vpop.permute.xlu2 %243 }
  0x8a   :  { %v1387_v16 = vpop.permute.xlu0 %333 }
  0x8b   :  { %v345_v17 = vsel %vm341_vm0, %v340_v15, %v1387_v16 }
  0x8c   :  { %v360_v18 = vmul.f32 %v352_v14, %v345_v17  ;;  %v172_v14 = vperm.slane %v1464_v10, 2 }
  0x8e   :  { %472 = vmatpush.msra.mxu3 %v360_v18 }
  0x91   :  { %v1397_v23 = vpop.permute.xlu1 %301  ;;  %v1413_v33 = vpop.permute.xlu2 %192 }
  0x92   :  { %v313_v24 = vsel %vm309_vm1, %v308_v9, %v1397_v23  ;;  %v1402_v25 = vpop.permute.xlu0 %337 }
  0x93   :  { %v342_v28 = vsel %vm341_vm0, %v1402_v25, %v340_v15  ;;  %v328_v29 = vmul.f32 %v320_v21, %v313_v24  ;;  %v1477_v24 = vld [vmem:[#allocation6 + $0x1] ss:$8 sm:$0xf] }
  0x94   :  { %v359_v30 = vmul.f32 %v351_v22, %v342_v28  ;;  %v140_v27 = vperm.slane %v1477_v24, 2  ;;  %v349_v28 = vperm.slane %v1383_v13, 0 }
  0x95   :  { %473 = vmatpush.msra.mxu3 %v328_v29  ;;  %v350_v29 = vperm.slane %v1383_v13, 1 }
  0x96   :  { %452 = vmatpush.msra.mxu2 %v359_v30 }
  0x98   :  { %453 = vmatpush.msra.mxu2 %v327_v32 }
  0x99   :  { %v1418_v36 = vpop.permute.xlu1 %273  ;;  %v1437_v48 = vpop.permute.xlu2 %160 }
  0x9a   :  { %v278_v37 = vsel %vm277_vm2, %v1418_v36, %v276_v11  ;;  %v1423_v38 = vpop.permute.xlu0 %269 }
  0x9b   :  { %v281_v39 = vsel %vm277_vm2, %v276_v11, %v1423_v38  ;;  %v295_v40 = vmul.f32 %v287_v34, %v278_v37  ;;  %v173_v11 = vperm.slane %v1464_v10, 3 }
  0x9c   :  { %v296_v41 = vmul.f32 %v288_v35, %v281_v39 }
  0x9d   :  { %454 = vmatpush.msra.mxu2 %v295_v40 }
  0x9e   :  { %474 = vmatpush.msra.mxu3 %v296_v41 }
  0xa1   :  { %v1439_v49 = vpop.permute.xlu1 %241  ;;  %v127_v63 = vpop.permute.xlu2 %126 }
  0xa2   :  { %v246_v50 = vsel %vm245_vm3, %v1439_v49, %v244_v19  ;;  %v1444_v51 = vpop.permute.xlu0 %237 }
  0xa3   :  { %v249_v52 = vsel %vm245_vm3, %v244_v19, %v1444_v51  ;;  %v263_v53 = vmul.f32 %v255_v44, %v246_v50  ;;  %v317_v44 = vperm.slane %v1392_v20, 0  ;;  %v286_v50 = vperm.slane %v1411_v31, 1 }
  0xa4   :  { %v264_v55 = vmul.f32 %v256_v46, %v249_v52  ;;  %v141_v46 = vperm.slane %v1477_v24, 3 }
  0xa5   :  { %455 = vmatpush.msra.mxu2 %v263_v53 }
  0xa6   :  { %475 = vmatpush.msra.mxu3 %v264_v55 }
  0xa7   :  { %456 = vmatpush.msra.mxu2 %v231_v54 }
  0xa8   :  { %476 = vmatpush.msra.mxu3 %v232_v56 }
  0xa9   :  { %v191_v60 = vpop.permute.xlu1 %190  ;;  %v1479_v26 = vpop.permute.xlu2 %91 }
  0xaa   :  { %v195_v61 = vsel %vm194_vm4, %v191_v60, %v1413_v33  ;;  %v1459_v62 = vpop.permute.xlu0 %188 }
  0xab   :  { %v196_v3 = vsel %vm194_vm4, %v1459_v62, %v191_v60  ;;  %v213_v4 = vmul.f32 %v205_v58, %v195_v61 }
  0xac   :  { %v212_v9 = vmul.f32 %v204_v59, %v196_v3  ;;  %v1518_v59 = vld [vmem:[#allocation6] ss:$8 sm:$0xf] }
  0xad   :  { %477 = vmatpush.msra.mxu3 %v213_v4 }
  0xae   :  { %457 = vmatpush.msra.mxu2 %v212_v9 }
  0xb1   :  { %v159_v15 = vpop.permute.xlu1 %158  ;;  %v272_v13 = vpop.permute.xlu2 %271 }
  0xb2   :  { %v163_v17 = vsel %vm162_vm5, %v159_v15, %v1437_v48  ;;  %v1472_v18 = vpop.permute.xlu0 %156  ;;  %v280_v52 = vsel %vm277_vm2, %v1423_v38, %v272_v13 }
  0xb3   :  { %v164_v19 = vsel %vm162_vm5, %v1472_v18, %v159_v15  ;;  %v181_v21 = vmul.f32 %v173_v11, %v163_v17  ;;  %v83_v11 = vld [vmem:[#allocation8] sm:$0xff]  ;;  %v254_v15 = vperm.slane %v1430_v43, 1  ;;  %v221_v17 = vperm.slane %v1428_v42, 0 }
  0xb4   :  { %v180_v22 = vmul.f32 %v172_v14, %v164_v19  ;;  %v253_v14 = vperm.slane %v1430_v43, 0  ;;  %v222_v19 = vperm.slane %v1428_v42, 1 }
  0xb5   :  { %478 = vmatpush.msra.mxu3 %v181_v21 }
  0xb6   :  { %458 = vmatpush.msra.mxu2 %v180_v22  ;;  %v230_v42 = vmul.f32 %v222_v19, %v1337_v7  ;;  %v825_v19 = vld [vmem:[#allocation6 + $0x20] ss:$8 sm:$0xf] }
  0xb9   :  { %v1485_v30 = vpop.permute.xlu1 %124 }
  0xba   :  { %v132_v32 = vsel %vm130_vm6, %v1485_v30, %v127_v63  ;;  %v336_v34 = vpop.permute.xlu0 %335 }
  0xbb   :  { %v344_v35 = vsel %vm341_vm0, %v1387_v16, %v336_v34  ;;  %v343_v37 = vsel %vm341_vm0, %v336_v34, %v1402_v25  ;;  %v148_v39 = vmul.f32 %v140_v27, %v132_v32  ;;  %v285_v16 = vperm.slane %v1411_v31, 0  ;;  %v155_v34 = vpop.permute.xlu2 %154 }
  0xbc   :  { %v357_v40 = vmul.f32 %v349_v28, %v344_v35  ;;  %v358_v41 = vmul.f32 %v350_v29, %v343_v37  ;;  %v279_v25 = vsel %vm277_vm2, %v272_v13, %v1418_v36  ;;  %v203_v29 = vperm.slane %v1451_v57, 1 }
  0xbd   :  { %459 = vmatpush.msra.mxu2 %v148_v39  ;;  %v293_v38 = vmul.f32 %v285_v16, %v280_v52  ;;  %v294_v58 = vmul.f32 %v286_v50, %v279_v25  ;;  %v202_v32 = vperm.slane %v1451_v57, 0  ;;  %v229_v37 = vmul.f32 %v221_v17, %v1308_v5 }
  0xbe   :  { %412 = vmatpush.msra.mxu0 %v357_v40  ;;  %432 = vmatpush.msra.mxu1 %v358_v41  ;;  %v171_v57 = vperm.slane %v1464_v10, 1  ;;  %v165_v5 = vsel %vm162_vm5, %v155_v34, %v1472_v18  ;;  %v166_v7 = vsel %vm162_vm5, %v1437_v48, %v155_v34  ;;  %v139_v41 = vperm.slane %v1477_v24, 1  ;;  %v795_v34 = vld [vmem:[#allocation6 + $0x7] ss:$8 sm:$0xf] }
  0xbf   :  { %v106_v18 = vperm.slane %v1518_v59, 0 }
  0xc1   :  { %v304_v47 = vpop.permute.xlu1 %303 }
  0xc2   :  { %v311_v53 = vsel %vm309_vm1, %v304_v47, %v1379_v8  ;;  %v312_v20 = vsel %vm309_vm1, %v1397_v23, %v304_v47  ;;  %v1513_v54 = vpop.permute.xlu0 %128  ;;  %v108_v8 = vperm.slane %v1518_v59, 2  ;;  %v109_v23 = vperm.slane %v1518_v59, 3 }
  0xc3   :  { %v131_v31 = vsel %vm130_vm6, %v127_v63, %v1513_v54  ;;  %v325_v55 = vmul.f32 %v317_v44, %v312_v20  ;;  %v326_v36 = vmul.f32 %v318_v45, %v311_v53  ;;  %v179_v45 = vmul.f32 %v171_v57, %v165_v5 }
  0xc4   :  { %v149_v56 = vmul.f32 %v141_v46, %v131_v31  ;;  %v107_v46 = vperm.slane %v1518_v59, 1 }
  0xc5   :  { %413 = vmatpush.msra.mxu0 %v325_v55  ;;  %433 = vmatpush.msra.mxu1 %v326_v36  ;;  %v84_v55 = vld [vmem:[#allocation9] sm:$0xff] }
  0xc6   :  { %479 = vmatpush.msra.mxu3 %v149_v56 }
  0xc7   :  { %414 = vmatpush.msra.mxu0 %v293_v38  ;;  %434 = vmatpush.msra.mxu1 %v294_v58 }
  0xc9   :  { %v96_v60 = vpop.permute.xlu1 %95 }
  0xca   :  { %v94_v61 = vpop.permute.xlu0 %93 }
  0xcb   :  { %v100_v63 = vsel %vm99_vm7, %v94_v61, %v96_v60  ;;  %v101_v3 = vsel %vm99_vm7, %v1479_v26, %v94_v61 }
  0xcc   :  { %v116_v4 = vmul.f32 %v108_v8, %v101_v3  ;;  %v117_v9 = vmul.f32 %v109_v23, %v100_v63 }
  0xce   :  { %460 = vmatpush.msra.mxu2 %v116_v4  ;;  %480 = vmatpush.msra.mxu3 %v117_v9 }
  0xcf   :  { %1083 = vmatmul.msk.f32.vlgmr.msra.gmra.mxu3 %vm401_vm8, %v83_v11  ;;  %1082 = vmatmul.msk.f32.vlgmr.msra.gmra.mxu2 %vm401_vm8, %v83_v11 }
  0xd1   :  { %v187_v21 = vpop.permute.xlu1 %186 }
  0xd2   :  { %v240_v22 = vpop.permute.xlu0 %239  ;;  %v197_v39 = vsel %vm194_vm4, %v187_v21, %v1459_v62 }
  0xd3   :  { %v247_v27 = vsel %vm245_vm3, %v240_v22, %v1439_v49  ;;  %v248_v28 = vsel %vm245_vm3, %v1444_v51, %v240_v22  ;;  %v198_v49 = vsel %vm194_vm4, %v1413_v33, %v187_v21  ;;  %v170_v51 = vperm.slane %v1464_v10, 0 }
  0xd4   :  { %v261_v43 = vmul.f32 %v253_v14, %v248_v28  ;;  %v262_v35 = vmul.f32 %v254_v15, %v247_v27  ;;  %v211_v62 = vmul.f32 %v203_v29, %v197_v39  ;;  %v210_v40 = vmul.f32 %v202_v32, %v198_v49 }
  0xd5   :  { %v138_v33 = vperm.slane %v1477_v24, 0  ;;  %v178_v10 = vmul.f32 %v170_v51, %v166_v7  ;;  %v830_v21 = vperm.slane %v825_v19, 3  ;;  %v1685_v7 = vld [vmem:[#allocation6 + $0x6] ss:$8 sm:$0xf] }
  0xd6   :  { %415 = vmatpush.msra.mxu0 %v261_v43  ;;  %435 = vmatpush.msra.mxu1 %v262_v35  ;;  %v800_v43 = vperm.slane %v795_v34, 3  ;;  %v829_v35 = vperm.slane %v825_v19, 2 }
  0xd8   :  { %416 = vmatpush.msra.mxu0 %v229_v37  ;;  %436 = vmatpush.msra.mxu1 %v230_v42 }
  0xd9   :  { %v90_v13 = vpop.permute.xlu1 %89 }
  0xda   :  { %437 = vmatpush.msra.mxu1 %v211_v62  ;;  %v123_v44 = vpop.permute.xlu0 %122  ;;  %417 = vmatpush.msra.mxu0 %v210_v40  ;;  %v102_v48 = vsel %vm99_vm7, %v90_v13, %v1479_v26  ;;  %v103_v47 = vsel %vm99_vm7, %v96_v60, %v90_v13  ;;  %v770_v62 = vperm.slane %v1685_v7, 3  ;;  %v799_v40 = vperm.slane %v795_v34, 2 }
  0xdb   :  { %v133_v24 = vsel %vm130_vm6, %v123_v44, %v1485_v30  ;;  %v134_v16 = vsel %vm130_vm6, %v1513_v54, %v123_v44  ;;  %v114_v52 = vmul.f32 %v106_v18, %v103_v47  ;;  %v115_v53 = vmul.f32 %v107_v46, %v102_v48 }
  0xdc   :  { %418 = vmatpush.msra.mxu0 %v178_v10  ;;  %438 = vmatpush.msra.mxu1 %v179_v45  ;;  %v146_v50 = vmul.f32 %v138_v33, %v134_v16  ;;  %v147_v25 = vmul.f32 %v139_v41, %v133_v24  ;;  %v828_v33 = vperm.slane %v825_v19, 1  ;;  %v827_v44 = vperm.slane %v825_v19, 0 }
  0xdd   :  { %v797_v10 = vperm.slane %v795_v34, 0  ;;  %v798_v18 = vperm.slane %v795_v34, 1 }
  0xde   :  { %419 = vmatpush.msra.mxu0 %v146_v50  ;;  %439 = vmatpush.msra.mxu1 %v147_v25 }
  0xe0   :  { %420 = vmatpush.msra.mxu0 %v114_v52  ;;  %440 = vmatpush.msra.mxu1 %v115_v53 }
  0xe1   :  { %1080 = vmatmul.msk.f32.vlgmr.msra.gmra.mxu0 %vm401_vm8, %v83_v11  ;;  %1081 = vmatmul.msk.f32.vlgmr.msra.gmra.mxu1 %vm401_vm8, %v83_v11 }
 0x152   :  { %v482_v26 = vpop.f32.mrf.mxu3  ;;  %v462_v30 = vpop.f32.mrf.mxu2 }
 0x153   :  { %v488_v20 = vmax.f32 %v482_v26, 0.0  ;;  %v487_v31 = vmax.f32 %v462_v30, 0.0  ;;  %v1701_v26 = vld [vmem:[#allocation6 + $0x5] ss:$8 sm:$0xf] }
 0x154   :  { %v739_v19 = vperm.slane %v1701_v26, 2 }
 0x155   :  { %568 = vmatpush.msrb.mxu3 %v488_v20  ;;  %548 = vmatpush.msrb.mxu2 %v487_v31 }
 0x156   :  { %1087 = vmatmul.msk.f32.vlgmr.msrb.gmra.mxu3 %vm489_vm9, %v84_v55  ;;  %1086 = vmatmul.msk.f32.vlgmr.msrb.gmra.mxu2 %vm489_vm9, %v84_v55 }
 0x15e   :  { %v422_v54 = vpop.f32.mrf.mxu0  ;;  %v442_v36 = vpop.f32.mrf.mxu1 }
 0x15f   :  { %v485_v56 = vmax.f32 %v422_v54, 0.0  ;;  %v486_v38 = vmax.f32 %v442_v36, 0.0  ;;  %v769_v54 = vperm.slane %v1685_v7, 2  ;;  %v1705_v36 = vld [vmem:[#allocation6 + $0x4] ss:$8 sm:$0xf] }
 0x161   :  { %508 = vmatpush.msrb.mxu0 %v485_v56  ;;  %528 = vmatpush.msrb.mxu1 %v486_v38 }
 0x162   :  { %1084 = vmatmul.msk.f32.vlgmr.msrb.gmra.mxu0 %vm489_vm9, %v84_v55  ;;  %1085 = vmatmul.msk.f32.vlgmr.msrb.gmra.mxu1 %vm489_vm9, %v84_v55  ;;  %v740_v55 = vperm.slane %v1701_v26, 3 }
 0x1d9   :  { %v570_v60 = vpop.f32.mrf.mxu3 }
 0x1da   :  { %v1596_v3 = vadd.f32 %v570_v60, %v1295_v0 }
 0x1df   :  { %v510_v58 = vpop.f32.mrf.mxu0  ;;  %v530_v59 = vpop.f32.mrf.mxu1 }
 0x1e0   :  { %v1580_v8 = vadd.f32 %v510_v58, %v1299_v2  ;;  %v1583_v23 = vadd.f32 %v530_v59, %v1334_v6  ;;  %v1601_v2 = vmax.f32 %v1596_v3, 0.0  ;;  %v550_v6 = vpop.f32.mrf.mxu2  ;;  %v710_v58 = vperm.slane %v1705_v36, 3 }
 0x1e1   :  { %v1608_v4 = vadd.f32 %v550_v6, %v1297_v1 }
 0x1e2   :  { %v1586_v61 = vmax.f32 %v1580_v8, 0.0  ;;  %v1589_v63 = vmax.f32 %v1583_v23, 0.0 }
 0x1e3   :  { %v1613_v0 = vmax.f32 %v1608_v4, 0.0 }
 0x1e4   :  { %587 = vrot.lane.b32.xlu1 %v1589_v63, %s1256_s16  ;;  %617 = vrot.lane.b32.xlu0 %v1589_v63, %s1255_s15 }
 0x1e5   :  { %813 = vrot.lane.b32.xlu2 %v1586_v61, %s1249_s2 }
 0x1ec   :  { %819 = vrot.lane.b32.xlu1 %v1601_v2, %s1249_s2  ;;  %785 = vrot.lane.b32.xlu0 %v1589_v63, %s1250_s3 }
 0x1ed   :  { %783 = vrot.lane.b32.xlu2 %v1586_v61, %s1250_s3 }
 0x1f4   :  { %789 = vrot.lane.b32.xlu1 %v1601_v2, %s1250_s3  ;;  %817 = vrot.lane.b32.xlu0 %v1613_v0, %s1249_s2 }
 0x1f5   :  { %753 = vrot.lane.b32.xlu2 %v1586_v61, %s1251_s11 }
 0x1fc   :  { %759 = vrot.lane.b32.xlu1 %v1601_v2, %s1251_s11  ;;  %787 = vrot.lane.b32.xlu0 %v1613_v0, %s1250_s3 }
 0x1fd   :  { %723 = vrot.lane.b32.xlu2 %v1586_v61, %s1252_s12 }
 0x204   :  { %729 = vrot.lane.b32.xlu1 %v1601_v2, %s1252_s12  ;;  %757 = vrot.lane.b32.xlu0 %v1613_v0, %s1251_s11 }
 0x205   :  { %677 = vrot.lane.b32.xlu2 %v1589_v63, %s1253_s13 }
 0x20c   :  { %681 = vrot.lane.b32.xlu1 %v1601_v2, %s1253_s13  ;;  %727 = vrot.lane.b32.xlu0 %v1613_v0, %s1252_s12 }
 0x20d   :  { %647 = vrot.lane.b32.xlu2 %v1589_v63, %s1254_s14 }
 0x214   :  { %651 = vrot.lane.b32.xlu1 %v1601_v2, %s1254_s14  ;;  %679 = vrot.lane.b32.xlu0 %v1613_v0, %s1253_s13 }
 0x215   :  { %815 = vrot.lane.b32.xlu2 %v1589_v63, %s1249_s2 }
 0x21c   :  { %619 = vrot.lane.b32.xlu1 %v1613_v0, %s1255_s15  ;;  %649 = vrot.lane.b32.xlu0 %v1613_v0, %s1254_s14 }
 0x21d   :  { %621 = vrot.lane.b32.xlu2 %v1601_v2, %s1255_s15 }
 0x224   :  { %755 = vrot.lane.b32.xlu1 %v1589_v63, %s1251_s11  ;;  %591 = vrot.lane.b32.xlu0 %v1601_v2, %s1256_s16 }
 0x225   :  { %589 = vrot.lane.b32.xlu2 %v1613_v0, %s1256_s16 }
 0x22c   :  { %645 = vrot.lane.b32.xlu1 %v1586_v61, %s1254_s14  ;;  %675 = vrot.lane.b32.xlu0 %v1586_v61, %s1253_s13 }
 0x22d   :  { %725 = vrot.lane.b32.xlu2 %v1589_v63, %s1252_s12 }
 0x234   :  { %585 = vrot.lane.b32.xlu0 %v1586_v61, %s1256_s16 }
 0x235   :  { %615 = vrot.lane.b32.xlu2 %v1586_v61, %s1255_s15 }
 0x23f   :  { %v814_v1 = vpop.permute.xlu2 %813 }
 0x247   :  { %v784_v9 = vpop.permute.xlu2 %783 }
 0x24f   :  { %v1667_v11 = vpop.permute.xlu2 %753 }
 0x256   :  { %v1669_v14 = vpop.permute.xlu1 %587  ;;  %v1671_v15 = vpop.permute.xlu0 %617 }
 0x257   :  { %v1673_v17 = vpop.permute.xlu2 %723 }
 0x25e   :  { %v820_v22 = vpop.permute.xlu1 %819  ;;  %v786_v27 = vpop.permute.xlu0 %785 }
 0x25f   :  { %v824_v28 = vsel %vm341_vm0, %v820_v22, %v814_v1  ;;  %v1677_v29 = vpop.permute.xlu2 %677  ;;  %v793_v25 = vsel %vm309_vm1, %v784_v9, %v786_v27 }
 0x260   :  { %v838_v32 = vmul.f32 %v830_v21, %v824_v28  ;;  %v805_v31 = vmul.f32 %v797_v10, %v793_v25 }
 0x262   :  { %949 = vmatpush.msra.mxu3 %v838_v32 }
 0x266   :  { %v790_v37 = vpop.permute.xlu1 %789  ;;  %v818_v42 = vpop.permute.xlu0 %817 }
 0x267   :  { %v794_v39 = vsel %vm309_vm1, %v790_v37, %v784_v9  ;;  %v821_v49 = vsel %vm341_vm0, %v818_v42, %v820_v22  ;;  %v1683_v51 = vpop.permute.xlu2 %647  ;;  %v718_v9 = vmul.f32 %v710_v58, %v1601_v2 }
 0x268   :  { %v808_v57 = vmul.f32 %v800_v43, %v794_v39  ;;  %v837_v5 = vmul.f32 %v829_v35, %v821_v49  ;;  %v1725_v43 = vld [vmem:[#allocation6 + $0x3] ss:$8 sm:$0xf] }
 0x269   :  { %v691_v2 = vperm.slane %v1725_v43, 2 }
 0x26a   :  { %929 = vmatpush.msra.mxu2 %v837_v5  ;;  %950 = vmatpush.msra.mxu3 %v808_v57 }
 0x26e   :  { %v760_v41 = vpop.permute.xlu1 %759  ;;  %v788_v13 = vpop.permute.xlu0 %787 }
 0x26f   :  { %v764_v45 = vsel %vm277_vm2, %v760_v41, %v1667_v11  ;;  %v791_v46 = vsel %vm309_vm1, %v788_v13, %v790_v37  ;;  %v816_v48 = vpop.permute.xlu2 %815  ;;  %v792_v24 = vsel %vm309_vm1, %v786_v27, %v788_v13  ;;  %v709_v27 = vperm.slane %v1705_v36, 2 }
 0x270   :  { %v778_v47 = vmul.f32 %v770_v62, %v764_v45  ;;  %v807_v16 = vmul.f32 %v799_v40, %v791_v46  ;;  %v822_v50 = vsel %vm341_vm0, %v816_v48, %v818_v42  ;;  %v823_v52 = vsel %vm341_vm0, %v814_v1, %v816_v48 }
 0x271   :  { %v836_v53 = vmul.f32 %v828_v33, %v822_v50  ;;  %v835_v30 = vmul.f32 %v827_v44, %v823_v52  ;;  %v806_v20 = vmul.f32 %v798_v18, %v792_v24  ;;  %v717_v35 = vmul.f32 %v709_v27, %v1613_v0  ;;  %v1738_v0 = vld [vmem:[#allocation6 + $0x2] ss:$8 sm:$0xf]  ;;  %v1740_v33 = vld [vmem:[#allocation6 + $0x1] ss:$8 sm:$0xf] }
 0x272   :  { %930 = vmatpush.msra.mxu2 %v807_v16  ;;  %951 = vmatpush.msra.mxu3 %v778_v47  ;;  %v692_v37 = vperm.slane %v1725_v43, 3  ;;  %v662_v13 = vperm.slane %v1738_v0, 3  ;;  %v1744_v44 = vld [vmem:[#allocation6] ss:$8 sm:$0xf]  ;;  %v631_v10 = vperm.slane %v1740_v33, 2 }
 0x273   :  { %909 = vmatpush.msra.mxu1 %v836_v53  ;;  %889 = vmatpush.msra.mxu0 %v835_v30  ;;  %v632_v45 = vperm.slane %v1740_v33, 3  ;;  %v601_v50 = vperm.slane %v1744_v44, 2  ;;  %v602_v58 = vperm.slane %v1744_v44, 3 }
 0x275   :  { %910 = vmatpush.msra.mxu1 %v806_v20  ;;  %890 = vmatpush.msra.mxu0 %v805_v31 }
 0x276   :  { %v730_v56 = vpop.permute.xlu1 %729  ;;  %v1707_v38 = vpop.permute.xlu0 %757 }
 0x277   :  { %v734_v59 = vsel %vm245_vm3, %v730_v56, %v1673_v17  ;;  %v761_v60 = vsel %vm277_vm2, %v1707_v38, %v760_v41  ;;  %v1721_v28 = vpop.permute.xlu2 %621  ;;  %v661_v41 = vperm.slane %v1738_v0, 2 }
 0x278   :  { %v748_v6 = vmul.f32 %v740_v55, %v734_v59  ;;  %v777_v1 = vmul.f32 %v769_v54, %v761_v60  ;;  %v767_v54 = vperm.slane %v1685_v7, 0  ;;  %v1767_v59 = vld [vmem:[#allocation8 + $0x8] sm:$0xff]  ;;  %v737_v60 = vperm.slane %v1701_v26, 0 }
 0x27a   :  { %931 = vmatpush.msra.mxu2 %v777_v1  ;;  %952 = vmatpush.msra.mxu3 %v748_v6  ;;  %v738_v6 = vperm.slane %v1701_v26, 1 }
 0x27c   :  { %953 = vmatpush.msra.mxu3 %v718_v9 }
 0x27e   :  { %v1718_v21 = vpop.permute.xlu1 %681  ;;  %v728_v22 = vpop.permute.xlu0 %727 }
 0x27f   :  { %v731_v32 = vsel %vm245_vm3, %v728_v22, %v730_v56  ;;  %v590_v40 = vpop.permute.xlu2 %589  ;;  %v768_v56 = vperm.slane %v1685_v7, 1 }
 0x280   :  { %v747_v34 = vmul.f32 %v739_v19, %v731_v32  ;;  %v594_v53 = vsel %vm99_vm7, %v1669_v14, %v590_v40  ;;  %v707_v19 = vperm.slane %v1705_v36, 0 }
 0x281   :  { %v609_v55 = vmul.f32 %v601_v50, %v594_v53 }
 0x282   :  { %932 = vmatpush.msra.mxu2 %v747_v34 }
 0x284   :  { %933 = vmatpush.msra.mxu2 %v717_v35 }
 0x286   :  { %v1730_v42 = vpop.permute.xlu1 %651  ;;  %v680_v39 = vpop.permute.xlu0 %679 }
 0x287   :  { %v683_v49 = vsel %vm194_vm4, %v680_v39, %v1718_v21  ;;  %v684_v57 = vsel %vm194_vm4, %v1677_v29, %v680_v39  ;;  %v726_v31 = vpop.permute.xlu2 %725 }
 0x288   :  { %v699_v5 = vmul.f32 %v691_v2, %v684_v57  ;;  %v700_v62 = vmul.f32 %v692_v37, %v683_v49  ;;  %v733_v27 = vsel %vm245_vm3, %v1673_v17, %v726_v31  ;;  %v732_v34 = vsel %vm245_vm3, %v726_v31, %v728_v22 }
 0x289   :  { %v708_v37 = vperm.slane %v1705_v36, 1  ;;  %v745_v39 = vmul.f32 %v737_v60, %v733_v27  ;;  %v690_v49 = vperm.slane %v1725_v43, 1  ;;  %v715_v22 = vmul.f32 %v707_v19, %v1586_v61 }
 0x28a   :  { %934 = vmatpush.msra.mxu2 %v699_v5  ;;  %954 = vmatpush.msra.mxu3 %v700_v62  ;;  %v659_v36 = vperm.slane %v1738_v0, 0  ;;  %v660_v62 = vperm.slane %v1738_v0, 1  ;;  %v629_v0 = vperm.slane %v1740_v33, 0 }
 0x28b   :  { %v716_v5 = vmul.f32 %v708_v37, %v1589_v63 }
 0x28e   :  { %v620_v18 = vpop.permute.xlu1 %619  ;;  %v650_v46 = vpop.permute.xlu0 %649 }
 0x28f   :  { %v623_v48 = vsel %vm130_vm6, %v620_v18, %v1721_v28  ;;  %v624_v47 = vsel %vm130_vm6, %v1671_v15, %v620_v18  ;;  %v653_v24 = vsel %vm162_vm5, %v650_v46, %v1730_v42  ;;  %v654_v16 = vsel %vm162_vm5, %v1683_v51, %v650_v46  ;;  %v616_v57 = vpop.permute.xlu2 %615 }
 0x290   :  { %v669_v25 = vmul.f32 %v661_v41, %v654_v16  ;;  %v670_v52 = vmul.f32 %v662_v13, %v653_v24  ;;  %v639_v30 = vmul.f32 %v631_v10, %v624_v47  ;;  %v640_v20 = vmul.f32 %v632_v45, %v623_v48 }
 0x291   :  { %v630_v10 = vperm.slane %v1740_v33, 1  ;;  %v599_v33 = vperm.slane %v1744_v44, 0  ;;  %v600_v47 = vperm.slane %v1744_v44, 1 }
 0x292   :  { %935 = vmatpush.msra.mxu2 %v669_v25  ;;  %955 = vmatpush.msra.mxu3 %v670_v52  ;;  %v580_v52 = vld [vmem:[#allocation9 + $0x8] sm:$0xff] }
 0x294   :  { %936 = vmatpush.msra.mxu2 %v639_v30  ;;  %956 = vmatpush.msra.mxu3 %v640_v20 }
 0x296   :  { %v756_v1 = vpop.permute.xlu1 %755  ;;  %v592_v9 = vpop.permute.xlu0 %591  ;;  %937 = vmatpush.msra.mxu2 %v609_v55 }
 0x297   :  { %v762_v7 = vsel %vm277_vm2, %v756_v1, %v1707_v38  ;;  %v763_v32 = vsel %vm277_vm2, %v1667_v11, %v756_v1  ;;  %v593_v26 = vsel %vm99_vm7, %v590_v40, %v592_v9  ;;  %1090 = vmatmul.msk.f32.vlgmr.msra.gmra.mxu2 %vm401_vm8, %v1767_v59  ;;  %v746_v38 = vmul.f32 %v738_v6, %v732_v34 }
 0x298   :  { %v775_v35 = vmul.f32 %v767_v54, %v763_v32  ;;  %v776_v2 = vmul.f32 %v768_v56, %v762_v7  ;;  %v610_v17 = vmul.f32 %v602_v58, %v593_v26  ;;  %v689_v11 = vperm.slane %v1725_v43, 0 }
 0x29a   :  { %891 = vmatpush.msra.mxu0 %v775_v35  ;;  %911 = vmatpush.msra.mxu1 %v776_v2 }
 0x29b   :  { %957 = vmatpush.msra.mxu3 %v610_v17 }
 0x29c   :  { %1091 = vmatmul.msk.f32.vlgmr.msra.gmra.mxu3 %vm401_vm8, %v1767_v59  ;;  %892 = vmatpush.msra.mxu0 %v745_v39 }
 0x29d   :  { %912 = vmatpush.msra.mxu1 %v746_v38 }
 0x29e   :  { %v646_v40 = vpop.permute.xlu1 %645  ;;  %v676_v41 = vpop.permute.xlu0 %675  ;;  %893 = vmatpush.msra.mxu0 %v715_v22 }
 0x29f   :  { %v655_v13 = vsel %vm162_vm5, %v646_v40, %v1683_v51  ;;  %v656_v43 = vsel %vm162_vm5, %v1730_v42, %v646_v40  ;;  %v685_v61 = vsel %vm194_vm4, %v676_v41, %v1677_v29  ;;  %v686_v63 = vsel %vm194_vm4, %v1718_v21, %v676_v41  ;;  %913 = vmatpush.msra.mxu1 %v716_v5 }
 0x2a0   :  { %v697_v45 = vmul.f32 %v689_v11, %v686_v63  ;;  %v698_v18 = vmul.f32 %v690_v49, %v685_v61  ;;  %v625_v51 = vsel %vm130_vm6, %v616_v57, %v1671_v15  ;;  %v626_v42 = vsel %vm130_vm6, %v1721_v28, %v616_v57 }
 0x2a1   :  { %v667_v29 = vmul.f32 %v659_v36, %v656_v43  ;;  %v668_v46 = vmul.f32 %v660_v62, %v655_v13  ;;  %v637_v21 = vmul.f32 %v629_v0, %v626_v42  ;;  %v638_v48 = vmul.f32 %v630_v10, %v625_v51 }
 0x2a2   :  { %894 = vmatpush.msra.mxu0 %v697_v45  ;;  %914 = vmatpush.msra.mxu1 %v698_v18 }
 0x2a4   :  { %895 = vmatpush.msra.mxu0 %v667_v29  ;;  %915 = vmatpush.msra.mxu1 %v668_v46 }
 0x2a6   :  { %v586_v24 = vpop.permute.xlu0 %585  ;;  %896 = vmatpush.msra.mxu0 %v637_v21  ;;  %916 = vmatpush.msra.mxu1 %v638_v48 }
 0x2a7   :  { %v595_v15 = vsel %vm99_vm7, %v586_v24, %v1669_v14  ;;  %v596_v28 = vsel %vm99_vm7, %v592_v9, %v586_v24 }
 0x2a8   :  { %v607_v16 = vmul.f32 %v599_v33, %v596_v28  ;;  %v608_v50 = vmul.f32 %v600_v47, %v595_v15 }
 0x2aa   :  { %897 = vmatpush.msra.mxu0 %v607_v16  ;;  %917 = vmatpush.msra.mxu1 %v608_v50 }
 0x2ab   :  { %1088 = vmatmul.msk.f32.vlgmr.msra.gmra.mxu0 %vm401_vm8, %v1767_v59  ;;  %1089 = vmatmul.msk.f32.vlgmr.msra.gmra.mxu1 %vm401_vm8, %v1767_v59 }
 0x31a   :  { %v939_v44 = vpop.f32.mrf.mxu2 }
 0x31b   :  { %v964_v25 = vmax.f32 %v939_v44, 0.0 }
 0x31d   :  { %1024 = vmatpush.msrb.mxu2 %v964_v25 }
 0x31e   :  { %1094 = vmatmul.msk.f32.vlgmr.msrb.gmra.mxu2 %vm489_vm9, %v580_v52 }
 0x31f   :  { %v959_v14 = vpop.f32.mrf.mxu3 }
 0x320   :  { %v965_v53 = vmax.f32 %v959_v14, 0.0 }
 0x322   :  { %1044 = vmatpush.msrb.mxu3 %v965_v53 }
 0x323   :  { %1095 = vmatmul.msk.f32.vlgmr.msrb.gmra.mxu3 %vm489_vm9, %v580_v52 }
 0x328   :  { %v899_v12 = vpop.f32.mrf.mxu0  ;;  %v919_v30 = vpop.f32.mrf.mxu1 }
 0x329   :  { %v962_v20 = vmax.f32 %v899_v12, 0.0  ;;  %v963_v31 = vmax.f32 %v919_v30, 0.0 }
 0x32b   :  { %984 = vmatpush.msrb.mxu0 %v962_v20  ;;  %1004 = vmatpush.msrb.mxu1 %v963_v31 }
 0x32c   :  { %1092 = vmatmul.msk.f32.vlgmr.msrb.gmra.mxu0 %vm489_vm9, %v580_v52  ;;  %1093 = vmatmul.msk.f32.vlgmr.msrb.gmra.mxu1 %vm489_vm9, %v580_v52 }
 0x3a1   :  { %v1026_v55 = vpop.f32.mrf.mxu2 }
 0x3a2   :  { %v1051_v54 = vadd.f32 %v1026_v55, %v1608_v4 }
 0x3a4   :  { %v1055_v56 = vmax.f32 %v1051_v54, 0.0 }
 0x3a6   :  { %1059 = vst [vmem:[#allocation11 + $0x10] sm:$0xff] %v1055_v56  ;;  %v1046_v58 = vpop.f32.mrf.mxu3 }
 0x3a7   :  { %v1052_v59 = vadd.f32 %v1046_v58, %v1596_v3 }
 0x3a9   :  { %v1056_v60 = vmax.f32 %v1052_v59, 0.0  ;;  %v986_v6 = vpop.f32.mrf.mxu0  ;;  %v1006_v1 = vpop.f32.mrf.mxu1 }
 0x3aa   :  { %v1049_v9 = vadd.f32 %v986_v6, %v1580_v8  ;;  %v1050_v19 = vadd.f32 %v1006_v1, %v1583_v23 }
 0x3ab   :  { %1060 = vst [vmem:[#allocation11 + $0x18] sm:$0xff] %v1056_v60 }
 0x3ac   :  { %v1053_v4 = vmax.f32 %v1049_v9, 0.0  ;;  %v1054_v27 = vmax.f32 %v1050_v19, 0.0 }
 0x3ae   :  { %1057 = vst [vmem:[#allocation11] sm:$0xff] %v1053_v4 }
 0x3af   :  { %1058 = vst [vmem:[#allocation11 + $0x8] sm:$0xff] %v1054_v27 }
 0x3b0   :  { %1071 = dma.vmem_to_hbm [thread:$0]  %s1067_s18, 512, %s1069_s21, [#allocation5]  }
 0x3b1   :  { %1239 = dma.done.wait [#allocation5], 512  }
 0x3b2   :  { %1240 = vsyncadd [#allocation5], 4294966784 }
 0x3b3   :  { %1076 = vsyncpa [#allocation4], 1 }
 0x3b4   :  { %1077 = vsyncpa [#allocation7], 1 }
 0x3b5   :  { %1078 = vsyncpa [#allocation10], 1 }
 0x3b6   :  { %1079 = vsyncpa [#allocation5], 1 }

</bundles_post_ra>
